<compile_context>
chip_gen: v6e
topology: v6e:2x2x1
jax: 0.10.0
libtpu: 0.0.40
codegen_flags: <defaults>
</compile_context>

<pallas_src>
import jax
import jax.numpy as jnp
from jax.experimental import pallas as pl
from jax.experimental.pallas import tpu as pltpu


def linear_kernel(x_ref, w_ref, o_ref):
    # x_ref: (IN, B)     -- batch on the lane axis
    # w_ref: (IN+1, 1)   -- PyTorch weight.T with the bias appended as last row
    # o_ref: (1, B)      -- lane-major output slab
    x = x_ref[...]                                   # (IN, B)
    w = w_ref[...]                                   # (IN+1, 1)
    w_main = w[:-1, :]                               # (IN, 1), broadcast over lanes
    b = w[-1:, :].astype(jnp.float32)                # (1, 1) bias

    # VPU elementwise multiply (native input dtype) + XLU sublane reduction.
    # Explicit f32 upcast before the sum so accumulation is f32 even for bf16
    # inputs (addresses the dtype correctness concern); no MXU for OUT=1.
    prod = (x * w_main).astype(jnp.float32)          # (IN, B) in f32
    acc = jnp.sum(prod, axis=0, keepdims=True)       # (1, B) in f32
    o_ref[...] = (acc + b).astype(o_ref.dtype)


def _linear_pallas(x, weight, bias):
    """y = x @ weight.T + bias, matching torch.nn.Linear(10, 1).

    x:      (B, IN)   float32
    weight: (OUT, IN) float32  (PyTorch convention, OUT == 1)
    bias:   (OUT,)    float32
    """
    B, IN = x.shape
    OUT = weight.shape[0]
    assert OUT == 1, "kernel specialized for Linear(10, 1) (OUT == 1)"

    # Fuse bias into the weight operand -> one fewer DMA descriptor.
    w_aug = jnp.concatenate([weight.T, bias[None, :]], axis=0)   # (IN+1, 1)
    # Batch on lanes: (B, IN) -> (IN, B).  Tiny transpose, fuses in XLA.
    x_t = x.T                                                    # (IN, B)

    itemsize = jnp.dtype(x.dtype).itemsize
    cost = pl.CostEstimate(
        flops=2 * B * IN * OUT,
        transcendentals=0,
        bytes_accessed=(IN * B + (IN + 1) * OUT + OUT * B) * itemsize,
    )

    y_t = pl.pallas_call(
        linear_kernel,
        out_shape=jax.ShapeDtypeStruct((OUT, B), x.dtype),       # (1, B)
        in_specs=[
            pl.BlockSpec(memory_space=pltpu.MemorySpace.VMEM),   # x (IN, B)
            pl.BlockSpec(memory_space=pltpu.MemorySpace.VMEM),   # w_aug (IN+1, 1)
        ],
        out_specs=pl.BlockSpec(memory_space=pltpu.MemorySpace.VMEM),
        cost_estimate=cost,
    )(x_t, w_aug)

    # (1, B) -> (B, 1): degenerate-dim transpose, layout-trivial in XLA.
    return y_t.T


# Trace/launch path compiled once.
linear_pallas = jax.jit(_linear_pallas)


if __name__ == "__main__":
    B, IN, OUT = 8, 10, 1

    key = jax.random.PRNGKey(0)
    kx, kw, kb = jax.random.split(key, 3)

    # Deterministic parameter init mimicking torch.nn.Linear default:
    # uniform(-1/sqrt(IN), 1/sqrt(IN)) for both weight and bias.
    bound = 1.0 / (IN ** 0.5)
    weight = jax.random.uniform(kw, (OUT, IN), jnp.float32, -bound, bound)
    bias = jax.random.uniform(kb, (OUT,), jnp.float32, -bound, bound)

    x = jax.random.normal(kx, (B, IN), jnp.float32)

    y = linear_pallas(x, weight, bias)
    y = jax.block_until_ready(y)

    # Sanity check against pure-JAX reference.
    y_ref = x @ weight.T + bias
    assert y.shape == (B, OUT)
    assert jnp.allclose(y, y_ref, atol=1e-5), "mismatch vs reference"

    print("KERNEL_OK")
</pallas_src>

<mosaic_0001>
module attributes {stable_mosaic.version = 11 : i64} {
  func.func @linear_kernel(%arg0: memref<10x8xf32, #tpu.memory_space<vmem>>, %arg1: memref<11x1xf32, #tpu.memory_space<vmem>>, %arg2: memref<1x8xf32, #tpu.memory_space<vmem>>) attributes {dimension_semantics = [], scalar_prefetch = 0 : i64, scratch_operands = 0 : i64, tpu.core_type = #tpu.core_type<tc>} {
    %c0 = arith.constant 0 : index
    %c0_0 = arith.constant 0 : index
    %0 = vector.load %arg0[%c0, %c0_0] : memref<10x8xf32, #tpu.memory_space<vmem>>, vector<10x8xf32>
    %c0_1 = arith.constant 0 : index
    %c0_2 = arith.constant 0 : index
    %1 = vector.load %arg1[%c0_1, %c0_2] : memref<11x1xf32, #tpu.memory_space<vmem>>, vector<11x1xf32>
    %2 = vector.extract_strided_slice %1 {offsets = [0, 0], sizes = [10, 1], strides = [1, 1]} : vector<11x1xf32> to vector<10x1xf32>
    %3 = vector.extract_strided_slice %1 {offsets = [10, 0], sizes = [1, 1], strides = [1, 1]} : vector<11x1xf32> to vector<1x1xf32>
    %4 = vector.broadcast %2 : vector<10x1xf32> to vector<10x8xf32>
    %5 = arith.mulf %0, %4 : vector<10x8xf32>
    %cst = arith.constant dense<0.000000e+00> : vector<8xf32>
    %6 = vector.multi_reduction <add>, %5, %cst [0] : vector<10x8xf32> to vector<8xf32>
    %7 = vector.shape_cast %6 : vector<8xf32> to vector<1x8xf32>
    %8 = vector.broadcast %3 : vector<1x1xf32> to vector<1x8xf32>
    %9 = arith.addf %7, %8 : vector<1x8xf32>
    %c0_3 = arith.constant 0 : index
    %c0_4 = arith.constant 0 : index
    %10 = vector.load %arg2[%c0_3, %c0_4] : memref<1x8xf32, #tpu.memory_space<vmem>>, vector<1x8xf32>
    tpu.vector_store %arg2[%c0_3, %c0_4], %9 {strides = array<i32>} : memref<1x8xf32, #tpu.memory_space<vmem>>, vector<1x8xf32>,
    return
  }
}

</mosaic_0001>

<bundles_post_ra>
// kernel: _linear_pallas.1
= control target key start
LH: loop header
LB: loop body
LE: loop exit
PB: predicated region body
PF: predicated region fallthrough
CT: control target
= control target key end

     0   :  { %v81_v1 = vmov 0   ;;  %s113_s0 = inlined_call_operand.vmem [shape: f32[10,8], index: 0, kind: input, shape index: {}]   ;;  %s114_s1 = inlined_call_operand.vmem [shape: f32[11,1], index: 1, kind: input, shape index: {}]   ;;  %s115_s2 = inlined_call_operand.hbm [shape: f32[1,8], index: 2, kind: output, shape index: {}]  }
   0x1   :  { %v14_v0 = vld [vmem:[%s114_s1] sm:$0xff]  ;;  %58 = vset.pattern.permute.xlu0 %v81_v1 }
   0x2   :  { %7 = vsyncpa [#allocation3], 0  ;;  %18 = vperm.xlu0 %58, %v14_v0   ;;  %v15_v2 = vld [vmem:[%s114_s1 + $0x8] sm:$0x7]  ;;  %v12_v4 = vld [vmem:[%s113_s0] sm:$0xff]  ;;  %vm28_vm0 = vcmask 64512  }
   0x3   :  { %v13_v5 = vld [vmem:[%s113_s0 + $0x8] sm:$0x3]  ;;  %vm30_vm1 = vcmask 58368   ;;  %s82_s1 = smov [#allocation2]   ;;  %vm40_vm2 = vcmask 59394  }
   0x4   :  { %s48_s17 = sshll.u32 %s82_s1, 4  ;;  %s49_s17 = int_to_ptr.vmem [resolvable:$true] %s48_s17 }
   0x5   :  { %s59_s0 = scalar_lea.vmem %s49_s17, 16  ;;  %s63_s18 = scalar_lea.vmem %s49_s17, 32 }
   0x6   :  { %23 = vperm.xlu0 %58, %v15_v2   ;;  %p60_p0 = scmp.ne.s32.totalorder %s49_s17, %s59_s0  ;;  %p64_p1 = scmp.lt.s32.totalorder %s49_s17, %s49_s17 }
   0x7   :  { %p65_p2 = scmp.lt.s32.totalorder %s63_s18, %s59_s0 }
   0x9   :  { %p66_p3 = por %p65_p2, %p64_p1 }
   0xb   :  { %p67_p4 = pnand %p66_p3, %p60_p0 }
  0x7d   :  { %v19_v3 = vpop.permute.xlu0 %18 }
  0x7e   :  { %v26_v6 = vmul.f32 %v19_v3, %v12_v4 }
  0x80   :  { %v29_v9 = vsel %vm28_vm0, %v26_v6, 0.0 }
  0x81   :  { %v24_v7 = vpop.permute.xlu0 %23 }
  0x82   :  { %v27_v8 = vmul.f32 %v24_v7, %v13_v5 }
  0x84   :  { %v31_v10 = vsel %vm30_vm1, %v27_v8, 0.0 }
  0x85   :  { %v32_v11 = vadd.f32 %v31_v10, %v29_v9 }
  0x87   :  { %v33_v12 = vrot.slane %v32_v11, 4 }
  0x89   :  { %v34_v13 = vadd.f32 %v33_v12, %v32_v11 }
  0x8b   :  { %v35_v14 = vrot.slane %v34_v13, 2 }
  0x8d   :  { %v36_v15 = vadd.f32 %v35_v14, %v34_v13 }
  0x8f   :  { %v37_v16 = vrot.slane %v36_v15, 1 }
  0x91   :  { %v38_v17 = vadd.f32 %v37_v16, %v36_v15 }
  0x93   :  { %v39_v18 = vadd.f32 %v38_v17, %v24_v7 }
  0x95   :  { %41 = vst.msk [vmem:[#allocation2 - $0x2] sm:$0x4] %vm40_vm2, %v39_v18 }
  0x96   :  { %70 = shalt.err (!%p67_p4)
}
  0x97   :  { %51 = dma.vmem_to_hbm [thread:$0]  %s49_s17, 16, %s115_s2, [#allocation3]  }
  0x98   :  { %79 = dma.done.wait [#allocation3], 16  }
  0x99   :  { %80 = vsyncadd [#allocation3], 4294967280 }
  0x9a   :  { %55 = vsyncpa [#allocation3], 1 }

</bundles_post_ra>
